<compile_context>
chip_gen: v5e
topology: v5e:2x2
jax: 0.10.0
libtpu: 0.0.40
codegen_flags: <defaults>
</compile_context>

<pallas_src>
import jax
import jax.numpy as jnp
from jax.experimental import pallas as pl
from jax.experimental.pallas import tpu as pltpu

BN_EPS = 1e-5
LANE = 128
SUBLANE = 8
NUM_GIN_LAYERS = 4   # num_layers - 1 in the PyTorch module
NUM_HEADS = 5        # num_layers prediction heads == grid size


def _round_up(x, m):
    return ((x + m - 1) // m) * m


def _pad2(x, rows, cols):
    r, c = x.shape
    return jnp.pad(x, ((0, rows - r), (0, cols - c)))


def _bn(x, gamma, beta, mean, var):
    # inference-mode BatchNorm1d (used only by the pure-JAX reference)
    return gamma * (x - mean) * jax.lax.rsqrt(var + BN_EPS) + beta


# ---------------------------------------------------------------------------
# Fused kernel, grid=(NUM_HEADS,).  Step l:
#   score += (P @ h) @ wp[l] + bp[l]          (readout head for hidden_rep[l])
#   if l < 4:  h = relu((relu((A_hat @ h) @ w1[l] + t1[l])) @ w2[l] + t2[l])
#
#   a_ref  : (Np, Np) bf16   adjacency with self-loop folded in (A + I), resident
#   p_ref  : (Bp, Np) bf16   graph pooling matrix (SumPooling = P @ h), resident
#   h0_ref : (Np, Dp) f32    input node features, resident
#   w1/w2  : (Dp, Dp) bf16   per-layer MLP linears with BatchNorm folded in
#   t1/t2  : (1, Dp)  f32    per-layer folded BatchNorm biases
#   wp     : (Dp, Dp) bf16   per-layer prediction-head weights, bp: (1, Dp) f32
#   out    : (Bp, Dp) f32    resident score accumulator (lane-dense)
#   h_sc   : (Np, Dp) f32    VMEM scratch carrying h across grid steps
# ---------------------------------------------------------------------------
def gin_fused_kernel(a_ref, p_ref, h0_ref,
                     w1_ref, t1_ref, w2_ref, t2_ref,
                     wp_ref, bp_ref, out_ref, h_sc):
    l = pl.program_id(0)

    @pl.when(l == 0)
    def _init():
        h_sc[...] = h0_ref[...]
        out_ref[...] = jnp.zeros_like(out_ref)

    h = h_sc[...]
    hb = h.astype(jnp.bfloat16)          # bf16 operand for the MXU, f32 accum

    # Readout head for the current hidden representation (SumPooling + Linear)
    pooled = jnp.dot(p_ref[...], hb, preferred_element_type=jnp.float32)
    out_ref[...] += (jnp.dot(pooled.astype(jnp.bfloat16), wp_ref[...],
                             preferred_element_type=jnp.float32) + bp_ref[...])

    # GIN layer l (skipped on the final, readout-only grid step)
    @pl.when(l < NUM_GIN_LAYERS)
    def _layer():
        # aggregation; self-loop already inside A_hat: (1+eps)*h + sum_neighbors
        agg = jnp.dot(a_ref[...], hb, preferred_element_type=jnp.float32)
        # MLP linear 1 (+ folded BN1) + relu
        z = jnp.dot(agg.astype(jnp.bfloat16), w1_ref[...],
                    preferred_element_type=jnp.float32) + t1_ref[...]
        z = jnp.maximum(z, 0.0)
        # MLP linear 2 (+ folded outer BN2) + relu
        z = jnp.dot(z.astype(jnp.bfloat16), w2_ref[...],
                    preferred_element_type=jnp.float32) + t2_ref[...]
        h_sc[...] = jnp.maximum(z, 0.0)


def gin_forward_pallas(a_hat_bf16, pool_bf16, h0_pad, folded):
    n_pad = a_hat_bf16.shape[0]
    b_pad = pool_bf16.shape[0]
    d_pad = h0_pad.shape[1]

    # Constant index_map -> block stays resident across the whole layer grid.
    def resident(shape):
        return pl.BlockSpec(shape, lambda l: (0, 0))

    # Leading (squeezed) layer dim indexed by the grid step -> double-buffered.
    def per_layer(r, c):
        return pl.BlockSpec((None, r, c), lambda l: (l, 0, 0))

    flops = 2 * (NUM_GIN_LAYERS * (n_pad * n_pad * d_pad + 2 * n_pad * d_pad * d_pad)
                 + NUM_HEADS * (b_pad * n_pad * d_pad + b_pad * d_pad * d_pad))
    bytes_accessed = (
        a_hat_bf16.size * 2 + pool_bf16.size * 2 + h0_pad.size * 4
        + sum(int(v.size) * v.dtype.itemsize for v in folded.values())
        + b_pad * d_pad * 4)

    grid_spec = pltpu.PrefetchScalarGridSpec(
        num_scalar_prefetch=0,
        grid=(NUM_HEADS,),
        in_specs=[
            resident((n_pad, n_pad)),     # A_hat   (bf16, DMA'd once)
            resident((b_pad, n_pad)),     # pool    (bf16, DMA'd once)
            resident((n_pad, d_pad)),     # h0      (f32,  DMA'd once)
            per_layer(d_pad, d_pad),      # w1[l]   (bf16)
            per_layer(1, d_pad),          # t1[l]   (f32)
            per_layer(d_pad, d_pad),      # w2[l]   (bf16)
            per_layer(1, d_pad),          # t2[l]   (f32)
            per_layer(d_pad, d_pad),      # wp[l]   (bf16)
            per_layer(1, d_pad),          # bp[l]   (f32)
        ],
        out_specs=resident((b_pad, d_pad)),
        scratch_shapes=[pltpu.VMEM((n_pad, d_pad), jnp.float32)],
    )

    return pl.pallas_call(
        gin_fused_kernel,
        out_shape=jax.ShapeDtypeStruct((b_pad, d_pad), jnp.float32),
        grid_spec=grid_spec,
        compiler_params=pltpu.CompilerParams(
            dimension_semantics=("arbitrary",),      # sequential layer dependency
            vmem_limit_bytes=32 * 1024 * 1024),      # raise over v5e's 16 MiB default,
                                                     # still within v7x's 64 MiB physical
        cost_estimate=pl.CostEstimate(flops=int(flops), transcendentals=0,
                                      bytes_accessed=int(bytes_accessed)),
    )(a_hat_bf16, pool_bf16, h0_pad,
      folded["w1"], folded["t1"], folded["w2"], folded["t2"],
      folded["wp"], folded["bp"])


# ---------------------------------------------------------------------------
# One-time static parameter transform: fold BN into weights, pad to 128 lanes,
# stack per-layer, cast the matmul weights to bf16 (biases stay f32).
# ---------------------------------------------------------------------------
def fold_and_pad_params(params, d_pad):
    def fold(w, gamma, beta, mean, var):
        # BN(x @ w) = x @ (w * s) + (beta - mean * s),  s = gamma*rsqrt(var+eps)
        s = gamma * jax.lax.rsqrt(var + BN_EPS)
        return w * s, beta - mean * s

    w1s, t1s, w2s, t2s = [], [], [], []
    for lp in params["gin_layers"]:
        w1f, t1f = fold(lp["w1"], lp["g1"], lp["b1"], lp["m1"], lp["v1"])
        w2f, t2f = fold(lp["w2"], lp["g2"], lp["b2"], lp["m2"], lp["v2"])
        w1s.append(_pad2(w1f, d_pad, d_pad))
        t1s.append(_pad2(t1f, 1, d_pad))
        w2s.append(_pad2(w2f, d_pad, d_pad))
        t2s.append(_pad2(t2f, 1, d_pad))
    # Pad the GIN-layer stacks to NUM_HEADS entries so the layer-grid index_map
    # is a plain (l, 0, 0); the extra zero layer is never used (guarded by
    # pl.when(l < NUM_GIN_LAYERS)).
    w1s.append(jnp.zeros((d_pad, d_pad), jnp.float32))
    t1s.append(jnp.zeros((1, d_pad), jnp.float32))
    w2s.append(jnp.zeros((d_pad, d_pad), jnp.float32))
    t2s.append(jnp.zeros((1, d_pad), jnp.float32))

    wps, bps = [], []
    for pr in params["preds"]:
        wps.append(_pad2(pr["w"], d_pad, d_pad))
        bps.append(_pad2(pr["b"], 1, d_pad))

    return dict(
        w1=jnp.stack(w1s).astype(jnp.bfloat16),
        t1=jnp.stack(t1s),
        w2=jnp.stack(w2s).astype(jnp.bfloat16),
        t2=jnp.stack(t2s),
        wp=jnp.stack(wps).astype(jnp.bfloat16),
        bp=jnp.stack(bps),
    )


# ---------------------------------------------------------------------------
# Pure-JAX f32 reference (un-folded BN, un-padded) for correctness checking.
# ---------------------------------------------------------------------------
def gin_forward_ref(a, pool_mat, h, params):
    hidden_rep = [h]
    for p in params["gin_layers"]:
        agg = a @ h + h
        z = agg @ p["w1"]
        z = _bn(z, p["g1"], p["b1"], p["m1"], p["v1"])
        z = jnp.maximum(z, 0.0)
        z = z @ p["w2"]
        z = _bn(z, p["g2"], p["b2"], p["m2"], p["v2"])
        h = jnp.maximum(z, 0.0)
        hidden_rep.append(h)
    score = 0.0
    for hi, pred in zip(hidden_rep, params["preds"]):
        score = score + ((pool_mat @ hi) @ pred["w"] + pred["b"])
    return score


# ---------------------------------------------------------------------------
# Deterministic parameter construction (shapes follow the PyTorch __init__)
# ---------------------------------------------------------------------------
def make_params(key, input_dim, hidden_dim, output_dim):
    num_layers = 5
    keys = jax.random.split(key, 32)
    ki = iter(range(32))

    def bn_params(dim):
        # PyTorch BatchNorm1d defaults: gamma=1, beta=0, running stats 0 / 1
        return (jnp.ones((1, dim), jnp.float32),
                jnp.zeros((1, dim), jnp.float32),
                jnp.zeros((1, dim), jnp.float32),
                jnp.ones((1, dim), jnp.float32))

    gin_layers = []
    for layer in range(num_layers - 1):
        d_in = input_dim if layer == 0 else hidden_dim
        w1 = 0.1 * jax.random.normal(keys[next(ki)], (d_in, hidden_dim), jnp.float32)
        w2 = 0.1 * jax.random.normal(keys[next(ki)], (hidden_dim, hidden_dim), jnp.float32)
        g1, b1, m1, v1 = bn_params(hidden_dim)   # BN inside the MLP
        g2, b2, m2, v2 = bn_params(hidden_dim)   # GIN.batch_norms[layer]
        gin_layers.append(dict(w1=w1, w2=w2,
                               g1=g1, b1=b1, m1=m1, v1=v1,
                               g2=g2, b2=b2, m2=m2, v2=v2))

    preds = []
    for layer in range(num_layers):
        d_in = input_dim if layer == 0 else hidden_dim
        w = 0.1 * jax.random.normal(keys[next(ki)], (d_in, output_dim), jnp.float32)
        b = 0.1 * jax.random.normal(keys[next(ki)], (1, output_dim), jnp.float32)
        preds.append(dict(w=w, b=b))

    return dict(gin_layers=gin_layers, preds=preds)


def make_graph(num_graphs, nodes_per_graph):
    """Two disjoint ring graphs: dense adjacency + pooling matrix."""
    n = num_graphs * nodes_per_graph
    a = jnp.zeros((n, n), jnp.float32)
    for g in range(num_graphs):
        base = g * nodes_per_graph
        for i in range(nodes_per_graph):
            src = base + i
            dst = base + (i + 1) % nodes_per_graph
            a = a.at[dst, src].set(1.0)
            a = a.at[src, dst].set(1.0)
    pool = jnp.zeros((num_graphs, n), jnp.float32)
    for g in range(num_graphs):
        pool = pool.at[g, g * nodes_per_graph:(g + 1) * nodes_per_graph].set(1.0)
    return a, pool


if __name__ == "__main__":
    input_dim, hidden_dim, output_dim = 16, 32, 8
    num_graphs, nodes_per_graph = 2, 8
    n_nodes = num_graphs * nodes_per_graph

    key = jax.random.PRNGKey(0)
    k_param, k_feat = jax.random.split(key)

    params = make_params(k_param, input_dim, hidden_dim, output_dim)
    a, pool_mat = make_graph(num_graphs, nodes_per_graph)
    h0 = jax.random.normal(k_feat, (n_nodes, input_dim), jnp.float32)

    # ---- one-time static preprocessing for the kernel ----------------------
    d_pad = LANE                                   # all feature dims -> 128 lanes
    n_pad = _round_up(n_nodes, LANE)               # node count -> 128
    b_pad = max(_round_up(num_graphs, SUBLANE), 16)  # packed bf16 sublane group

    a_hat = a + jnp.eye(n_nodes, dtype=jnp.float32)          # fold (1+eps)*h self-loop
    a_hat_bf16 = _pad2(a_hat, n_pad, n_pad).astype(jnp.bfloat16)   # {0,1,2}: exact in bf16
    pool_bf16 = _pad2(pool_mat, b_pad, n_pad).astype(jnp.bfloat16)
    h0_pad = _pad2(h0, n_pad, d_pad)
    folded = fold_and_pad_params(params, d_pad)

    out_pad = gin_forward_pallas(a_hat_bf16, pool_bf16, h0_pad, folded)
    out_pad = jax.block_until_ready(out_pad)
    out = out_pad[:num_graphs, :output_dim]

    ref = gin_forward_ref(a, pool_mat, h0, params)
    assert out.shape == (num_graphs, output_dim), out.shape
    # bf16 MXU operands (weights + activations) -> relaxed tolerance vs f32 ref
    assert jnp.allclose(out, ref, atol=5e-2, rtol=5e-2), (out, ref)

    print("KERNEL_OK")
</pallas_src>

<mosaic_0001>
module attributes {stable_mosaic.version = 11 : i64} {
  func.func @gin_fused_kernel(%arg0: i32, %arg1: memref<128x128xbf16, #tpu.memory_space<vmem>>, %arg2: memref<16x128xbf16, #tpu.memory_space<vmem>>, %arg3: memref<128x128xf32, #tpu.memory_space<vmem>>, %arg4: memref<1x128x128xbf16, #tpu.memory_space<vmem>>, %arg5: memref<1x1x128xf32, #tpu.memory_space<vmem>>, %arg6: memref<1x128x128xbf16, #tpu.memory_space<vmem>>, %arg7: memref<1x1x128xf32, #tpu.memory_space<vmem>>, %arg8: memref<1x128x128xbf16, #tpu.memory_space<vmem>>, %arg9: memref<1x1x128xf32, #tpu.memory_space<vmem>>, %arg10: memref<16x128xf32, #tpu.memory_space<vmem>>, %arg11: memref<128x128xf32, #tpu.memory_space<vmem>>) attributes {dimension_semantics = [#tpu.dimension_semantics<arbitrary>], iteration_bounds = array<i64: 5>, scalar_prefetch = 0 : i64, scratch_operands = 1 : i64, tpu.core_type = #tpu.core_type<tc>, window_params = [{pipeline_mode = #tpu.pipeline_mode<synchronous>, transform_indices = @transform_0, window_bounds = array<i64: 128, 128>}, {pipeline_mode = #tpu.pipeline_mode<synchronous>, transform_indices = @transform_1, window_bounds = array<i64: 16, 128>}, {pipeline_mode = #tpu.pipeline_mode<synchronous>, transform_indices = @transform_2, window_bounds = array<i64: 128, 128>}, {transform_indices = @transform_3, window_bounds = array<i64: 1, 128, 128>}, {transform_indices = @transform_4, window_bounds = array<i64: 1, 1, 128>}, {transform_indices = @transform_5, window_bounds = array<i64: 1, 128, 128>}, {transform_indices = @transform_6, window_bounds = array<i64: 1, 1, 128>}, {transform_indices = @transform_7, window_bounds = array<i64: 1, 128, 128>}, {transform_indices = @transform_8, window_bounds = array<i64: 1, 1, 128>}, {pipeline_mode = #tpu.pipeline_mode<synchronous>, transform_indices = @transform_9, window_bounds = array<i64: 16, 128>}]} {
    %c0_i32 = arith.constant 0 : i32
    %0 = arith.cmpi eq, %arg0, %c0_i32 : i32
    %1 = arith.extui %0 : i1 to i32
    %c0_i32_0 = arith.constant 0 : i32
    %2 = arith.cmpi ne, %1, %c0_i32_0 : i32
    scf.if %2 {
      %c0_16 = arith.constant 0 : index
      %c0_17 = arith.constant 0 : index
      %21 = vector.load %arg3[%c0_16, %c0_17] : memref<128x128xf32, #tpu.memory_space<vmem>>, vector<128x128xf32>
      %c0_18 = arith.constant 0 : index
      %c0_19 = arith.constant 0 : index
      %22 = vector.load %arg11[%c0_18, %c0_19] : memref<128x128xf32, #tpu.memory_space<vmem>>, vector<128x128xf32>
      tpu.vector_store %arg11[%c0_18, %c0_19], %21 {strides = array<i32>} : memref<128x128xf32, #tpu.memory_space<vmem>>, vector<128x128xf32>,
      %cst_20 = arith.constant 0.000000e+00 : f32
      %23 = vector.broadcast %cst_20 : f32 to vector<16x128xf32>
      %c0_21 = arith.constant 0 : index
      %c0_22 = arith.constant 0 : index
      %24 = vector.load %arg10[%c0_21, %c0_22] : memref<16x128xf32, #tpu.memory_space<vmem>>, vector<16x128xf32>
      tpu.vector_store %arg10[%c0_21, %c0_22], %23 {strides = array<i32>} : memref<16x128xf32, #tpu.memory_space<vmem>>, vector<16x128xf32>,
    } else {
    }
    %c0 = arith.constant 0 : index
    %c0_1 = arith.constant 0 : index
    %3 = vector.load %arg11[%c0, %c0_1] : memref<128x128xf32, #tpu.memory_space<vmem>>, vector<128x128xf32>
    %4 = arith.truncf %3 : vector<128x128xf32> to vector<128x128xbf16>
    %c0_2 = arith.constant 0 : index
    %c0_3 = arith.constant 0 : index
    %5 = vector.load %arg2[%c0_2, %c0_3] : memref<16x128xbf16, #tpu.memory_space<vmem>>, vector<16x128xbf16>
    %cst = arith.constant dense<0.000000e+00> : vector<16x128xf32>
    %6 = tpu.matmul %5, %4, %cst {dimension_numbers = #tpu.dot_dimension_numbers<[1], [0], [0], [1], [0, 0, 1, 1], [], []>} : vector<16x128xbf16>, vector<128x128xbf16>, vector<16x128xf32> -> vector<16x128xf32>
    %c0_4 = arith.constant 0 : index
    %c0_5 = arith.constant 0 : index
    %7 = vector.load %arg10[%c0_4, %c0_5] : memref<16x128xf32, #tpu.memory_space<vmem>>, vector<16x128xf32>
    %8 = arith.truncf %6 : vector<16x128xf32> to vector<16x128xbf16>
    %c0_6 = arith.constant 0 : index
    %c0_7 = arith.constant 0 : index
    %c0_8 = arith.constant 0 : index
    %9 = vector.load %arg8[%c0_6, %c0_7, %c0_8] : memref<1x128x128xbf16, #tpu.memory_space<vmem>>, vector<1x128x128xbf16>
    %10 = vector.shape_cast %9 : vector<1x128x128xbf16> to vector<128x128xbf16>
    %cst_9 = arith.constant dense<0.000000e+00> : vector<16x128xf32>
    %11 = tpu.matmul %8, %10, %cst_9 {dimension_numbers = #tpu.dot_dimension_numbers<[1], [0], [0], [1], [0, 0, 1, 1], [], []>} : vector<16x128xbf16>, vector<128x128xbf16>, vector<16x128xf32> -> vector<16x128xf32>
    %c0_10 = arith.constant 0 : index
    %c0_11 = arith.constant 0 : index
    %c0_12 = arith.constant 0 : index
    %12 = vector.load %arg9[%c0_10, %c0_11, %c0_12] : memref<1x1x128xf32, #tpu.memory_space<vmem>>, vector<1x1x128xf32>
    %13 = vector.shape_cast %12 : vector<1x1x128xf32> to vector<1x128xf32>
    %14 = vector.broadcast %13 : vector<1x128xf32> to vector<16x128xf32>
    %15 = arith.addf %11, %14 : vector<16x128xf32>
    %16 = arith.addf %7, %15 : vector<16x128xf32>
    %c0_13 = arith.constant 0 : index
    %c0_14 = arith.constant 0 : index
    %17 = vector.load %arg10[%c0_13, %c0_14] : memref<16x128xf32, #tpu.memory_space<vmem>>, vector<16x128xf32>
    tpu.vector_store %arg10[%c0_13, %c0_14], %16 {strides = array<i32>} : memref<16x128xf32, #tpu.memory_space<vmem>>, vector<16x128xf32>,
    %c4_i32 = arith.constant 4 : i32
    %18 = arith.cmpi slt, %arg0, %c4_i32 : i32
    %19 = arith.extui %18 : i1 to i32
    %c0_i32_15 = arith.constant 0 : i32
    %20 = arith.cmpi ne, %19, %c0_i32_15 : i32
    scf.if %20 {
      %c0_16 = arith.constant 0 : index
      %c0_17 = arith.constant 0 : index
      %21 = vector.load %arg1[%c0_16, %c0_17] : memref<128x128xbf16, #tpu.memory_space<vmem>>, vector<128x128xbf16>
      %cst_18 = arith.constant dense<0.000000e+00> : vector<128x128xf32>
      %22 = tpu.matmul %21, %4, %cst_18 {dimension_numbers = #tpu.dot_dimension_numbers<[1], [0], [0], [1], [0, 0, 1, 1], [], []>} : vector<128x128xbf16>, vector<128x128xbf16>, vector<128x128xf32> -> vector<128x128xf32>
      %23 = arith.truncf %22 : vector<128x128xf32> to vector<128x128xbf16>
      %c0_19 = arith.constant 0 : index
      %c0_20 = arith.constant 0 : index
      %c0_21 = arith.constant 0 : index
      %24 = vector.load %arg4[%c0_19, %c0_20, %c0_21] : memref<1x128x128xbf16, #tpu.memory_space<vmem>>, vector<1x128x128xbf16>
      %25 = vector.shape_cast %24 : vector<1x128x128xbf16> to vector<128x128xbf16>
      %cst_22 = arith.constant dense<0.000000e+00> : vector<128x128xf32>
      %26 = tpu.matmul %23, %25, %cst_22 {dimension_numbers = #tpu.dot_dimension_numbers<[1], [0], [0], [1], [0, 0, 1, 1], [], []>} : vector<128x128xbf16>, vector<128x128xbf16>, vector<128x128xf32> -> vector<128x128xf32>
      %c0_23 = arith.constant 0 : index
      %c0_24 = arith.constant 0 : index
      %c0_25 = arith.constant 0 : index
      %27 = vector.load %arg5[%c0_23, %c0_24, %c0_25] : memref<1x1x128xf32, #tpu.memory_space<vmem>>, vector<1x1x128xf32>
      %28 = vector.shape_cast %27 : vector<1x1x128xf32> to vector<1x128xf32>
      %29 = vector.broadcast %28 : vector<1x128xf32> to vector<128x128xf32>
      %30 = arith.addf %26, %29 : vector<128x128xf32>
      %cst_26 = arith.constant 0.000000e+00 : f32
      %31 = vector.broadcast %cst_26 : f32 to vector<128x128xf32>
      %32 = arith.maximumf %30, %31 : vector<128x128xf32>
      %33 = arith.truncf %32 : vector<128x128xf32> to vector<128x128xbf16>
      %c0_27 = arith.constant 0 : index
      %c0_28 = arith.constant 0 : index
      %c0_29 = arith.constant 0 : index
      %34 = vector.load %arg6[%c0_27, %c0_28, %c0_29] : memref<1x128x128xbf16, #tpu.memory_space<vmem>>, vector<1x128x128xbf16>
      %35 = vector.shape_cast %34 : vector<1x128x128xbf16> to vector<128x128xbf16>
      %cst_30 = arith.constant dense<0.000000e+00> : vector<128x128xf32>
      %36 = tpu.matmul %33, %35, %cst_30 {dimension_numbers = #tpu.dot_dimension_numbers<[1], [0], [0], [1], [0, 0, 1, 1], [], []>} : vector<128x128xbf16>, vector<128x128xbf16>, vector<128x128xf32> -> vector<128x128xf32>
      %c0_31 = arith.constant 0 : index
      %c0_32 = arith.constant 0 : index
      %c0_33 = arith.constant 0 : index
      %37 = vector.load %arg7[%c0_31, %c0_32, %c0_33] : memref<1x1x128xf32, #tpu.memory_space<vmem>>, vector<1x1x128xf32>
      %38 = vector.shape_cast %37 : vector<1x1x128xf32> to vector<1x128xf32>
      %39 = vector.broadcast %38 : vector<1x128xf32> to vector<128x128xf32>
      %40 = arith.addf %36, %39 : vector<128x128xf32>
      %cst_34 = arith.constant 0.000000e+00 : f32
      %41 = vector.broadcast %cst_34 : f32 to vector<128x128xf32>
      %42 = arith.maximumf %40, %41 : vector<128x128xf32>
      %c0_35 = arith.constant 0 : index
      %c0_36 = arith.constant 0 : index
      %43 = vector.load %arg11[%c0_35, %c0_36] : memref<128x128xf32, #tpu.memory_space<vmem>>, vector<128x128xf32>
      tpu.vector_store %arg11[%c0_35, %c0_36], %42 {strides = array<i32>} : memref<128x128xf32, #tpu.memory_space<vmem>>, vector<128x128xf32>,
    } else {
    }
    return
  }
  func.func @transform_0(%arg0: i32) -> (i32, i32) {
    %c0_i32 = arith.constant 0 : i32
    %c0_i32_0 = arith.constant 0 : i32
    %c0_i32_1 = arith.constant 0 : i32
    return %c0_i32, %c0_i32_0 : i32, i32
  }
  func.func @transform_1(%arg0: i32) -> (i32, i32) {
    %c0_i32 = arith.constant 0 : i32
    %c0_i32_0 = arith.constant 0 : i32
    %c0_i32_1 = arith.constant 0 : i32
    return %c0_i32, %c0_i32_0 : i32, i32
  }
  func.func @transform_2(%arg0: i32) -> (i32, i32) {
    %c0_i32 = arith.constant 0 : i32
    %c0_i32_0 = arith.constant 0 : i32
    %c0_i32_1 = arith.constant 0 : i32
    return %c0_i32, %c0_i32_0 : i32, i32
  }
  func.func @transform_3(%arg0: i32) -> (i32, i32, i32) {
    %c0_i32 = arith.constant 0 : i32
    %c0_i32_0 = arith.constant 0 : i32
    %c0_i32_1 = arith.constant 0 : i32
    return %arg0, %c0_i32, %c0_i32_0 : i32, i32, i32
  }
  func.func @transform_4(%arg0: i32) -> (i32, i32, i32) {
    %c0_i32 = arith.constant 0 : i32
    %c0_i32_0 = arith.constant 0 : i32
    %c0_i32_1 = arith.constant 0 : i32
    return %arg0, %c0_i32, %c0_i32_0 : i32, i32, i32
  }
  func.func @transform_5(%arg0: i32) -> (i32, i32, i32) {
    %c0_i32 = arith.constant 0 : i32
    %c0_i32_0 = arith.constant 0 : i32
    %c0_i32_1 = arith.constant 0 : i32
    return %arg0, %c0_i32, %c0_i32_0 : i32, i32, i32
  }
  func.func @transform_6(%arg0: i32) -> (i32, i32, i32) {
    %c0_i32 = arith.constant 0 : i32
    %c0_i32_0 = arith.constant 0 : i32
    %c0_i32_1 = arith.constant 0 : i32
    return %arg0, %c0_i32, %c0_i32_0 : i32, i32, i32
  }
  func.func @transform_7(%arg0: i32) -> (i32, i32, i32) {
    %c0_i32 = arith.constant 0 : i32
    %c0_i32_0 = arith.constant 0 : i32
    %c0_i32_1 = arith.constant 0 : i32
    return %arg0, %c0_i32, %c0_i32_0 : i32, i32, i32
  }
  func.func @transform_8(%arg0: i32) -> (i32, i32, i32) {
    %c0_i32 = arith.constant 0 : i32
    %c0_i32_0 = arith.constant 0 : i32
    %c0_i32_1 = arith.constant 0 : i32
    return %arg0, %c0_i32, %c0_i32_0 : i32, i32, i32
  }
  func.func @transform_9(%arg0: i32) -> (i32, i32) {
    %c0_i32 = arith.constant 0 : i32
    %c0_i32_0 = arith.constant 0 : i32
    %c0_i32_1 = arith.constant 0 : i32
    return %c0_i32, %c0_i32_0 : i32, i32
  }
}

</mosaic_0001>

<bundles_post_ra>
// kernel: tpu_custom_call.1
= control target key start
LH: loop header
LB: loop body
LE: loop exit
PB: predicated region body
PF: predicated region fallthrough
CT: control target
= control target key end

     0   :  { %s2339_s0 = inlined_call_operand.hbm [shape: bf16[128,128], index: 0, kind: input, shape index: {}]   ;;  %s2340_s1 = inlined_call_operand.hbm [shape: bf16[16,128], index: 1, kind: input, shape index: {}]   ;;  %s2341_s2 = inlined_call_operand.hbm [shape: f32[128,128], index: 2, kind: input, shape index: {}]   ;;  %s2342_s3 = inlined_call_operand.hbm [shape: bf16[5,128,128], index: 3, kind: input, shape index: {}]   ;;  %s2343_s4 = inlined_call_operand.hbm [shape: f32[5,1,128], index: 4, kind: input, shape index: {}]   ;;  %s2344_s5 = inlined_call_operand.hbm [shape: bf16[5,128,128], index: 5, kind: input, shape index: {}]   ;;  %s2345_s6 = inlined_call_operand.vmem [shape: f32[5,1,128], index: 6, kind: input, shape index: {}]   ;;  %s2346_s7 = inlined_call_operand.hbm [shape: bf16[5,128,128], index: 7, kind: input, shape index: {}]   ;;  %s2347_s8 = inlined_call_operand.hbm [shape: f32[5,1,128], index: 8, kind: input, shape index: {}]   ;;  %s2348_s9 = inlined_call_operand.hbm [shape: f32[16,128], index: 9, kind: output, shape index: {}]  }
   0x1   :  { %2361 = sst [smem:[#allocation30_spill]] %s2339_s0 }
   0x2   :  { %2362 = sst [smem:[#allocation31_spill]] %s2340_s1 }
   0x3   :  { %2363 = sst [smem:[#allocation32_spill]] %s2342_s3 }
   0x4   :  { %2364 = sst [smem:[#allocation33_spill]] %s2345_s6 }
   0x5   :  { %2365 = sst [smem:[#allocation34_spill]] %s2348_s9 }
   0x6   :  { %14 = vsyncpa [#allocation4], 0 }
   0x7   :  { %15 = vsyncpa [#allocation7], 0 }
   0x8   :  { %16 = vsyncpa [#allocation10], 0 }
   0x9   :  { %18 = vsyncpa [#allocation10 + $0x1], 0 }
   0xa   :  { %19 = vsyncpa [#allocation13], 0 }
   0xb   :  { %21 = vsyncpa [#allocation13 + $0x1], 0 }
   0xc   :  { %22 = vsyncpa [#allocation16], 0 }
   0xd   :  { %24 = vsyncpa [#allocation16 + $0x1], 0 }
   0xe   :  { %25 = vsyncpa [#allocation5], 0  ;;  %s2032_s30 = smov 0   ;;  %s2034_s10 = smov 0  }
   0xf   :  { %s2036_s11 = smov 0   ;;  %s2038_s12 = smov 0  }
  0x10 LB: > { %2366 = sst [smem:[#allocation24_spill]] %s1961_s10  ;;  %s2051_s13 = sadd.s32 4294967295, %s1969_s12   ;;  %s1969_s12 = sphi %s2038_s12, %s2392_s12   ;;  %s1965_s11 = sphi %s2036_s11, %s2395_s11   ;;  %s1961_s10 = sphi %s2034_s10, %s2394_s10   ;;  %s1957_s30 = sphi %s2032_s30, %s2393_s30  }
  0x11   : > { %2367 = sst [smem:[#allocation25_spill]] %s1965_s11  ;;  %p114_p0 = scmp.ne.s32.totalorder %s1961_s10, %s1957_s30 }
  0x12   : > { %2368 = sst [smem:[#allocation26_spill]] %s2051_s13  ;;  %p115_p1 = scmp.eq.s32.totalorder %s2051_s13, 0 }
  0x13   : > { %p1321_p2 = scmp.ge.s32.totalorder %s1969_s12, 1  ;;  %p276_p3 = scmp.lt.s32.totalorder %s1969_s12, 6 }
  0x14   : > { %p1322_p4 = scmp.ne.s32.totalorder %s2051_s13, 0  ;;  %p2060_p5 = por %p115_p1, %p114_p0 }
  0x15   : > { %p2064_p6 = pnand %p1321_p2, %p276_p3  ;;  %s2372_s1 = sld [smem:[#allocation31_spill]] }
  0x16   : > { %s2369_s14 = scalar_select %p2060_p5, 1, 0 }
  0x17   : > { %p1566_p7 = pneg %p2064_p6  ;;  %s1971_s19 = smov [#allocation6]  }
  0x18   : > { %2370 = sst [smem:[#allocation27_spill]] %s2369_s14  ;;  %s303_s20 = sshll.u32 %s1971_s19, 4  ;;  %s304_s20 = int_to_ptr.vmem [resolvable:$true] %s303_s20 }
  0x19   : > { %p2075_p8 = pnand %p1566_p7, %p115_p1  ;;  %s2080_s22 = sadd.s32 1, %s1969_s12  }
  0x1a   : > { %2374 = sst [smem:[#allocation28_spill]] %s2080_s22  ;;  %s2349_s23 = smov 64  }
  0x1b   : > { %s301_s18 = sshll.u32 %s2372_s1, 4  ;;  %s2351_s24 = smov 4   ;;  %s302_s18 = int_to_ptr.hbm [resolvable:$true] %s301_s18 }
  0x1c   : > { %1572 = dma.hbm_to_vmem [thread:$0]  (!%p2075_p8), %s302_s18, 128, %s304_s20, [#allocation7], %s2349_s23, %s2349_s23, %s2351_s24  }
  0x1d   : > { %s98_s25 = ssub.s32 %s1969_s12, %s2080_s22  ;;  %s101_s26 = sadd.s32 1, %s1965_s11 }
  0x1e   : > { %p99_p9 = scmp.eq.s32.totalorder %s98_s25, 0  ;;  %p108_p10 = scmp.ne.s32.totalorder %s1965_s11, %s1961_s10 }
  0x1f   : > { %p109_p11 = scmp.eq.s32.totalorder %s1969_s12, 0  ;;  %p1595_p12 = scmp.lt.s32.totalorder %s1969_s12, 5 }
  0x20   : > { %s2095_s27 = scalar_select %p99_p9, %s1965_s11, %s101_s26  }
  0x21   : > { %p110_p13 = por %p109_p11, %p108_p10  ;;  %s2099_s29 = sand.u32 1, %s1965_s11  }
  0x22   : > { %2375 = sst [smem:[#allocation29_spill]] %s2095_s27  ;;  %s2102_s30 = sshll.u32 %s2099_s29, 6 }
  0x23   : > { %s2105_s16 = sshll.u32 %s1969_s12, 6  ;;  %s2376_s3 = sld [smem:[#allocation32_spill]] }
  0x24   : > { %s335_s25 = scalar_lea.vmem [#allocation9], %s2102_s30  ;;  %p2114_p0 = pnand %p1595_p12, %p110_p13 }
  0x25   : > { %s343_s26 = sshll.u32 %s335_s25, 4  ;;  %s379_s1 = scalar_lea.hbm %s2344_s5, %s2105_s16  ;;  %s344_s26 = int_to_ptr.vmem [resolvable:$true] %s343_s26 }
  0x26   : > { %s2122_s27 = sshll.u32 %s379_s1, 4  ;;  %s2378_s17 = sand.u32 1, %s1969_s12   ;;  %s381_s27 = int_to_ptr.hbm [resolvable:$true] %s2122_s27 }
  0x27   : > { %s2126_s18 = scalar_lea.sflag [#allocation10], %s2378_s17  ;;  %p2130_p3 = pneg %p2114_p0 }
  0x29   : > { %s340_s19 = scalar_lea.hbm %s2376_s3, %s2105_s16  ;;  %s1684_s1 = scalar_lea.hbm %s2376_s3, 320 }
  0x2a   : > { %s341_s20 = sshll.u32 %s340_s19, 4  ;;  %s342_s20 = int_to_ptr.hbm [resolvable:$true] %s341_s20 }
  0x2b   : > { %s1677_s19 = sshra.s32 %s342_s20, 4  ;;  %s1678_s19 = int_to_ptr.hbm [resolvable:$true] %s1677_s19 }
  0x2c   : > { %s1679_s25 = scalar_lea.hbm %s1678_s19, 64  ;;  %p1685_p10 = scmp.lt.s32.totalorder %s1678_s19, %s2376_s3 }
  0x2d   : > { %p1680_p2 = scmp.ne.s32.totalorder %s1678_s19, %s1679_s25  ;;  %p1686_p11 = scmp.lt.s32.totalorder %s1684_s1, %s1679_s25 }
  0x2f   : > { %p1682_p7 = pnand %p2130_p3, %p1680_p2  ;;  %p1687_p12 = por %p1686_p11, %p1685_p10 }
  0x31   : > { %p1683_p9 = pneg %p1682_p7 }
  0x33   : > { %p1688_p13 = pnand %p1687_p12, %p1683_p9 }
  0x35   : > { %1691 = shalt.err (!%p1688_p13)
}
  0x36   : > { %s2380_s9 = smov 4   ;;  %s2381_s6 = smov 64  }
  0x37   : > { %1579 = dma.hbm_to_vmem [thread:$0]  (!%p2114_p0), %s342_s20, 1024, %s344_s26, %s2126_s18, %s2381_s6, %s2381_s6, %s2380_s9  }
  0x38   : > { %s374_s24 = scalar_lea.vmem [#allocation12], %s2102_s30  ;;  %s2382_s0 = sld [smem:[#allocation30_spill]] }
  0x39   : > { %s382_s28 = sshll.u32 %s374_s24, 4  ;;  %s2383_s1 = sand.u32 1, %s1969_s12   ;;  %s383_s28 = int_to_ptr.vmem [resolvable:$true] %s382_s28 }
  0x3a   : > { %s2155_s17 = scalar_lea.sflag [#allocation13], %s2383_s1  ;;  %s1707_s3 = sshra.s32 %s381_s27, 4  ;;  %s1708_s3 = int_to_ptr.hbm [resolvable:$true] %s1707_s3 }
  0x3b   : > { %s1709_s14 = scalar_lea.hbm %s1708_s3, 64  ;;  %s1714_s26 = scalar_lea.hbm %s2344_s5, 320 }
  0x3c   : > { %p1710_p2 = scmp.ne.s32.totalorder %s1708_s3, %s1709_s14  ;;  %p1715_p10 = scmp.lt.s32.totalorder %s1708_s3, %s2344_s5 }
  0x3d   : > { %p1716_p11 = scmp.lt.s32.totalorder %s1714_s26, %s1709_s14 }
  0x3e   : > { %s287_s25 = sshll.u32 %s2382_s0, 4  ;;  %p1712_p7 = pnand %p1710_p2, %p2130_p3  ;;  %s288_s25 = int_to_ptr.hbm [resolvable:$true] %s287_s25 }
  0x3f   : > { %p1717_p12 = por %p1716_p11, %p1715_p10 }
  0x40   : > { %p1713_p9 = pneg %p1712_p7 }
  0x42   : > { %p1718_p13 = pnand %p1717_p12, %p1713_p9 }
  0x44   : > { %1721 = shalt.err (!%p1718_p13)
}
  0x45   : > { %1585 = dma.hbm_to_vmem [thread:$0]  (!%p2114_p0), %s381_s27, 1024, %s383_s28, %s2155_s17, %s2381_s6, %s2381_s6, %s2380_s9  }
  0x46   : > { %s1974_s10 = smov [#allocation3]   ;;  %s315_s14 = sshll.u32 %s2341_s2, 4  ;;  %s316_s14 = int_to_ptr.hbm [resolvable:$true] %s315_s14 }
  0x47   : > { %s289_s22 = sshll.u32 %s1974_s10, 4  ;;  %s1975_s19 = smov [#allocation8]   ;;  %s290_s22 = int_to_ptr.vmem [resolvable:$true] %s289_s22 }
  0x48   : > { %1569 = dma.hbm_to_vmem [thread:$0]  (!%p2075_p8), %s288_s25, 1024, %s290_s22, [#allocation4], %s2381_s6, %s2381_s6, %s2380_s9  }
  0x49   : > { %s317_s1 = sshll.u32 %s1975_s19, 4  ;;  %s1976_s20 = smov 128   ;;  %s318_s1 = int_to_ptr.vmem [resolvable:$true] %s317_s1 }
  0x4a   : > { %s1977_s27 = smov 8   ;;  %s359_s24 = scalar_lea.hbm %s2343_s4, %s1969_s12 }
  0x4b   : > { %1575 = dma.hbm_to_vmem [thread:$0]  (!%p2075_p8), %s316_s14, 2048, %s318_s1, [#allocation7], %s1976_s20, %s1976_s20, %s1977_s27  }
  0x4c   : > { %s356_s10 = scalar_lea.vmem [#allocation11], %s2099_s29  ;;  %s361_s3 = sshll.u32 %s359_s24, 4  ;;  %s362_s3 = int_to_ptr.hbm [resolvable:$true] %s361_s3 }
  0x4d   : > { %s363_s13 = sshll.u32 %s356_s10, 4  ;;  %s1797_s0 = sshra.s32 %s362_s3, 4  ;;  %s364_s13 = int_to_ptr.vmem [resolvable:$true] %s363_s13  ;;  %s1798_s0 = int_to_ptr.hbm [resolvable:$true] %s1797_s0 }
  0x4e   : > { %s1799_s25 = scalar_lea.hbm %s1798_s0, 1  ;;  %s1804_s21 = scalar_lea.hbm %s2343_s4, 5 }
  0x4f   : > { %p1800_p2 = scmp.ne.s32.totalorder %s1798_s0, %s1799_s25  ;;  %p1805_p8 = scmp.lt.s32.totalorder %s1798_s0, %s2343_s4 }
  0x50   : > { %p1806_p10 = scmp.lt.s32.totalorder %s1804_s21, %s1799_s25 }
  0x51   : > { %p1802_p7 = pnand %p1800_p2, %p2130_p3 }
  0x52   : > { %p1807_p11 = por %p1806_p10, %p1805_p8 }
  0x53   : > { %p1803_p9 = pneg %p1802_p7 }
  0x55   : > { %p1808_p12 = pnand %p1807_p11, %p1803_p9 }
  0x57   : > { %1811 = shalt.err (!%p1808_p12)
}
  0x58   : > { %1582 = dma.hbm_to_vmem [thread:$0]  (!%p2114_p0), %s362_s3, 16, %s364_s13, %s2126_s18  }
  0x59   : > { %s407_s28 = scalar_lea.hbm %s2346_s7, %s2105_s16  ;;  %s402_s26 = scalar_lea.vmem [#allocation14], %s2102_s30 }
  0x5a   : > { %s410_s24 = sshll.u32 %s402_s26, 4  ;;  %s408_s10 = sshll.u32 %s407_s28, 4  ;;  %s411_s24 = int_to_ptr.vmem [resolvable:$true] %s410_s24  ;;  %s409_s10 = int_to_ptr.hbm [resolvable:$true] %s408_s10 }
  0x5b   : > { %s1827_s0 = sshra.s32 %s409_s10, 4  ;;  %s1834_s18 = scalar_lea.hbm %s2346_s7, 320  ;;  %s1828_s0 = int_to_ptr.hbm [resolvable:$true] %s1827_s0 }
  0x5c   : > { %s1829_s25 = scalar_lea.hbm %s1828_s0, 64  ;;  %p1835_p9 = scmp.lt.s32.totalorder %s1828_s0, %s2346_s7 }
  0x5d   : > { %p1830_p13 = scmp.ne.s32.totalorder %s1828_s0, %s1829_s25  ;;  %p1836_p8 = scmp.lt.s32.totalorder %s1834_s18, %s1829_s25 }
  0x5f   : > { %p1832_p2 = pnand %p1830_p13, %p2130_p3  ;;  %p1837_p10 = por %p1836_p8, %p1835_p9 }
  0x61   : > { %p1833_p7 = pneg %p1832_p2 }
  0x63   : > { %p1838_p11 = pnand %p1837_p10, %p1833_p7 }
  0x65   : > { %1841 = shalt.err (!%p1838_p11)
}
  0x66   : > { %1588 = dma.hbm_to_vmem [thread:$0]  (!%p2114_p0), %s409_s10, 1024, %s411_s24, %s2155_s17, %s2381_s6, %s2381_s6, %s2380_s9  }
  0x67   : > { %s426_s21 = scalar_lea.hbm %s2347_s8, %s1969_s12  ;;  %s423_s1 = scalar_lea.vmem [#allocation15], %s2099_s29 }
  0x68   : > { %s428_s14 = sshll.u32 %s426_s21, 4  ;;  %s430_s20 = sshll.u32 %s423_s1, 4  ;;  %s429_s14 = int_to_ptr.hbm [resolvable:$true] %s428_s14  ;;  %s431_s20 = int_to_ptr.vmem [resolvable:$true] %s430_s20 }
  0x69   : > { %s421_s27 = scalar_lea.sflag [#allocation16], %s2099_s29  ;;  %s1857_s28 = sshra.s32 %s429_s14, 4  ;;  %s1858_s28 = int_to_ptr.hbm [resolvable:$true] %s1857_s28 }
  0x6a   : > { %s1859_s26 = scalar_lea.hbm %s1858_s28, 1  ;;  %s1864_s6 = scalar_lea.hbm %s2347_s8, 5 }
  0x6b   : > { %p1860_p12 = scmp.ne.s32.totalorder %s1858_s28, %s1859_s26  ;;  %p1865_p7 = scmp.lt.s32.totalorder %s1858_s28, %s2347_s8 }
  0x6c   : > { %p1866_p9 = scmp.lt.s32.totalorder %s1864_s6, %s1859_s26 }
  0x6d   : > { %p1862_p13 = pnand %p1860_p12, %p2130_p3 }
  0x6e   : > { %p1867_p8 = por %p1866_p9, %p1865_p7 }
  0x6f   : > { %p1863_p2 = pneg %p1862_p13 }
  0x71   : > { %p1868_p10 = pnand %p1867_p8, %p1863_p2 }
  0x73   : > { %1871 = shalt.err (!%p1868_p10)
}
  0x74   : > { %1591 = dma.hbm_to_vmem [thread:$0]  (!%p2114_p0), %s429_s14, 16, %s431_s20, %s421_s27  }
  0x75   : > { %439 = sbr.rel (%p2064_p6) target bundleno = 1024 (0x400), region = 56  ;;  %s2384_s11 = sld [smem:[#allocation26_spill]] (!%p2064_p6) }
  0x7a   : > { %1932 = dma.done.wait (%p115_p1), [#allocation4], 1024  }
  0x7b   : > { %1934 = vsyncadd (%p115_p1), [#allocation4], 4294966272 }
  0x7c   : > { %1936 = dma.done.wait (%p115_p1), [#allocation7], 2176  }
  0x7d   : > { %1938 = vsyncadd (%p115_p1), [#allocation7], 4294965120  ;;  %s2385_s12 = sld [smem:[#allocation24_spill]]  ;;  %s456_s23 = sand.u32 1, %s2384_s11  }
  0x7e   : > { %s457_s10 = scalar_lea.sflag [#allocation10], %s456_s23 }
  0x83   : > { %s2244_s24 = sand.u32 1, %s2385_s12  }
  0x84   : > { %s1339_s15 = sshll.u32 %s2244_s24, 6 }
  0x85   : > { %s2247_s22 = scalar_lea.vmem [#allocation9], %s1339_s15 }
  0x86   : > { %1940 = dma.done.wait (%p2060_p5), %s457_s10, 1040  }
  0x87   : > { %1942 = vsyncadd (%p2060_p5), %s457_s10, 4294966256  ;;  %s469_s19 = scalar_lea.vmem [#allocation11], %s2244_s24  ;;  %s476_s18 = scalar_lea.sflag [#allocation13], %s456_s23 }
  0x88   : > { %s2254_s13 = scalar_lea.vmem [#allocation12], %s1339_s15 }
  0x89   : > { %1944 = dma.done.wait (%p2060_p5), %s476_s18, 2048  }
  0x8a   : > { %1946 = vsyncadd (%p2060_p5), %s476_s18, 4294965248  ;;  %s2260_s3 = scalar_lea.vmem [#allocation14], %s1339_s15  ;;  %s496_s30 = scalar_lea.sflag [#allocation16], %s2244_s24 }
  0x8b   : > { %s498_s16 = scalar_lea.vmem [#allocation15], %s2244_s24 }
  0x8c   : > { %1948 = dma.done.wait (%p2060_p5), %s496_s30, 16  }
  0x8d   : > { %1950 = vsyncadd (%p2060_p5), %s496_s30, 4294967280  ;;  %p550_p1 = scmp.lt.s32.totalorder %s2384_s11, 4  ;;  %s2387_s20 = sld [smem:[#allocation33_spill]] }
  0x8f   : > { %s2270_s21 = scalar_select %p550_p1, %s2384_s11, 4 }
  0x90   : > { %556 = sbr.rel (%p1322_p4) target bundleno = 168 (0xa8), region = 92 }
  0x93   : > { %s552_s27 = scalar_lea.vmem %s2387_s20, %s2270_s21 }
  0x95   : > { %v557_v0 = vld [vmem:[#allocation8] sm:$0xff]  ;;  %v558_v1 = vld [vmem:[#allocation8 + $0x8] sm:$0xff]  ;;  %v559_v2 = vld [vmem:[#allocation8 + $0x10] sm:$0xff]  ;;  %v1978_v16 = vmov 0.0  }
  0x96   : > { %573 = vst [vmem:[#allocation2 + $0x30] sm:$0xff] %v557_v0  ;;  %v560_v3 = vld [vmem:[#allocation8 + $0x18] sm:$0xff]  ;;  %v561_v4 = vld [vmem:[#allocation8 + $0x20] sm:$0xff]  ;;  %v562_v5 = vld [vmem:[#allocation8 + $0x28] sm:$0xff] }
  0x97   : > { %574 = vst [vmem:[#allocation2] sm:$0xff] %v558_v1  ;;  %v563_v6 = vld [vmem:[#allocation8 + $0x30] sm:$0xff]  ;;  %v564_v7 = vld [vmem:[#allocation8 + $0x38] sm:$0xff]  ;;  %v565_v8 = vld [vmem:[#allocation8 + $0x40] sm:$0xff] }
  0x98   : > { %575 = vst [vmem:[#allocation2 + $0x58] sm:$0xff] %v559_v2  ;;  %v566_v9 = vld [vmem:[#allocation8 + $0x48] sm:$0xff]  ;;  %v567_v10 = vld [vmem:[#allocation8 + $0x50] sm:$0xff]  ;;  %v568_v11 = vld [vmem:[#allocation8 + $0x58] sm:$0xff] }
  0x99   : > { %576 = vst [vmem:[#allocation2 + $0x18] sm:$0xff] %v560_v3  ;;  %v569_v12 = vld [vmem:[#allocation8 + $0x60] sm:$0xff]  ;;  %v570_v13 = vld [vmem:[#allocation8 + $0x68] sm:$0xff]  ;;  %v571_v14 = vld [vmem:[#allocation8 + $0x70] sm:$0xff] }
  0x9a   : > { %577 = vst [vmem:[#allocation2 + $0x50] sm:$0xff] %v561_v4  ;;  %v572_v15 = vld [vmem:[#allocation8 + $0x78] sm:$0xff] }
  0x9b   : > { %578 = vst [vmem:[#allocation2 + $0x68] sm:$0xff] %v562_v5 }
  0x9c   : > { %579 = vst [vmem:[#allocation2 + $0x8] sm:$0xff] %v563_v6 }
  0x9d   : > { %580 = vst [vmem:[#allocation2 + $0x48] sm:$0xff] %v564_v7 }
  0x9e   : > { %581 = vst [vmem:[#allocation2 + $0x40] sm:$0xff] %v565_v8 }
  0x9f   : > { %582 = vst [vmem:[#allocation2 + $0x20] sm:$0xff] %v566_v9 }
  0xa0   : > { %583 = vst [vmem:[#allocation2 + $0x10] sm:$0xff] %v567_v10 }
  0xa1   : > { %584 = vst [vmem:[#allocation2 + $0x38] sm:$0xff] %v568_v11 }
  0xa2   : > { %585 = vst [vmem:[#allocation2 + $0x60] sm:$0xff] %v569_v12 }
  0xa3   : > { %586 = vst [vmem:[#allocation2 + $0x70] sm:$0xff] %v570_v13 }
  0xa4   : > { %587 = vst [vmem:[#allocation2 + $0x78] sm:$0xff] %v571_v14 }
  0xa5   : > { %588 = vst [vmem:[#allocation2 + $0x28] sm:$0xff] %v572_v15 }
  0xa6   : > { %589 = vst [vmem:[#allocation17] sm:$0xff] %v1978_v16 }
  0xa7   : > { %590 = vst [vmem:[#allocation17 + $0x8] sm:$0xff] %v1978_v16 }
  0xa8 PF: > { %v601_v23 = vld [vmem:[#allocation2 + $0x10] sm:$0xff]  ;;  %v602_v24 = vld [vmem:[#allocation2 + $0x38] sm:$0xff]  ;;  %v1491_v25 = vld [vmem:[%s2260_s3 + $0x38] sm:$0xff]  ;;  %s2388_s28 = sld [smem:[#allocation26_spill]] }
  0xa9   : > { %v603_v19 = vld [vmem:[#allocation2 + $0x60] sm:$0xff]  ;;  %v612_v26 = vpack.c.bf16 %v602_v24, %v601_v23  ;;  %708 = vmatpush.bf16.msra.mxu1 %v1491_v25  ;;  %v1489_v31 = vld [vmem:[%s2260_s3 + $0x28] sm:$0xff]  ;;  %v597_v32 = vld [vmem:[#allocation2 + $0x8] sm:$0xff] }
  0xaa   : > { %v604_v21 = vld [vmem:[#allocation2 + $0x70] sm:$0xff]  ;;  %v1490_v27 = vld [vmem:[%s2260_s3 + $0x30] sm:$0xff]  ;;  %v598_v33 = vld [vmem:[#allocation2 + $0x48] sm:$0xff] }
  0xab   : > { %v605_v17 = vld [vmem:[#allocation2 + $0x78] sm:$0xff]  ;;  %v2281_v22 = vpack.c.bf16 %v604_v21, %v603_v19  ;;  %v599_v28 = vld [vmem:[#allocation2 + $0x40] sm:$0xff]  ;;  %v610_v34 = vpack.c.bf16 %v598_v33, %v597_v32  ;;  %v1488_v35 = vld [vmem:[%s2260_s3 + $0x20] sm:$0xff] }
  0xac   : > { %v606_v18 = vld [vmem:[#allocation2 + $0x28] sm:$0xff]  ;;  %v600_v29 = vld [vmem:[#allocation2 + $0x20] sm:$0xff]  ;;  %v595_v36 = vld [vmem:[#allocation2 + $0x50] sm:$0xff] }
  0xad   : > { %v2278_v20 = vpack.c.bf16 %v606_v18, %v605_v17  ;;  %v611_v30 = vpack.c.bf16 %v600_v29, %v599_v28  ;;  %709 = vmatpush.bf16.msra.mxu1 %v1490_v27  ;;  %v596_v37 = vld [vmem:[#allocation2 + $0x68] sm:$0xff]  ;;  %v593_v40 = vld [vmem:[#allocation2 + $0x58] sm:$0xff]  ;;  %v591_v43 = vld [vmem:[#allocation2 + $0x30] sm:$0xff] }
  0xae   : > { %v609_v38 = vpack.c.bf16 %v596_v37, %v595_v36  ;;  %v1487_v39 = vld [vmem:[%s2260_s3 + $0x18] sm:$0xff]  ;;  %v594_v41 = vld [vmem:[#allocation2 + $0x18] sm:$0xff]  ;;  %v1484_v49 = vld [vmem:[%s2260_s3] sm:$0xff]  ;;  %p1379_p4 = scmp.ge.s32.totalorder %s2388_s28, 4 }
  0xaf   : > { %623 = vmatpush.bf16.msra.mxu0 %v2278_v20  ;;  %v608_v42 = vpack.c.bf16 %v594_v41, %v593_v40  ;;  %v592_v44 = vld [vmem:[#allocation2] sm:$0xff]  ;;  %v1485_v48 = vld [vmem:[%s2260_s3 + $0x8] sm:$0xff] }
  0xb0   : > { %v607_v45 = vpack.c.bf16 %v592_v44, %v591_v43  ;;  %v1483_v46 = vld [vmem:[#allocation6] sm:$0xff]  ;;  %v637_v54 = vld [vmem:[#allocation17] sm:$0xff]  ;;  %v638_v58 = vld [vmem:[#allocation17 + $0x8] sm:$0xff] }
  0xb1   : > { %710 = vmatpush.bf16.msra.mxu1 %v1489_v31  ;;  %v1486_v47 = vld [vmem:[%s2260_s3 + $0x10] sm:$0xff] }
  0xb2   : > { %v1644_v53 = vld [vmem:[%s498_s16] ss:$0 sm:$0xff] }
  0xb3   : > { %624 = vmatpush.bf16.msra.mxu0 %v2281_v22 }
  0xb5   : > { %711 = vmatpush.bf16.msra.mxu1 %v1488_v35 }
  0xb7   : > { %625 = vmatpush.bf16.msra.mxu0 %v612_v26 }
  0xb9   : > { %712 = vmatpush.bf16.msra.mxu1 %v1487_v39 }
  0xbb   : > { %626 = vmatpush.bf16.msra.mxu0 %v611_v30 }
  0xbd   : > { %713 = vmatpush.bf16.msra.mxu1 %v1486_v47 }
  0xbf   : > { %627 = vmatpush.bf16.msra.mxu0 %v610_v34 }
  0xc1   : > { %714 = vmatpush.bf16.msra.mxu1 %v1485_v48 }
  0xc3   : > { %628 = vmatpush.bf16.msra.mxu0 %v609_v38 }
  0xc5   : > { %715 = vmatpush.bf16.msra.mxu1 %v1484_v49 }
  0xc7   : > { %629 = vmatpush.bf16.msra.mxu0 %v608_v42 }
  0xcb   : > { %630 = vmatpush.bf16.msra.mxu0 %v607_v45 }
  0xce   : > { %631 = vmatmul.bf16.vlgmr.msra.gmra.mxu0 %v1483_v46 }
 0x14b   : > { %v632_v50 = vpop.f32.mrf.mxu0 }
 0x153   : > { %v634_v51 = vpop.f32.mrf.mxu0 }
 0x154   : > { %v639_v52 = vpack.c.bf16 %v634_v51, %v632_v50 }
 0x156   : > { %716 = vmatmul.bf16.vlgmr.msra.gmra.mxu1 %v639_v52 }
 0x1d3   : > { %v717_v55 = vpop.f32.mrf.mxu1 }
 0x1d4   : > { %v718_v56 = vadd.f32 %v1644_v53, %v717_v55 }
 0x1d6   : > { %v722_v57 = vadd.f32 %v718_v56, %v637_v54 }
 0x1d8   : > { %724 = vst [vmem:[#allocation17] sm:$0xff] %v722_v57 }
 0x1db   : > { %v719_v59 = vpop.f32.mrf.mxu1 }
 0x1dc   : > { %v720_v60 = vadd.f32 %v1644_v53, %v719_v59  ;;  %729 = sbr.rel (%p1379_p4) target bundleno = 1013 (0x3f5), region = 96 }
 0x1de   : > { %v723_v61 = vadd.f32 %v720_v60, %v638_v58 }
 0x1e0   : > { %725 = vst [vmem:[#allocation17 + $0x8] sm:$0xff] %v723_v61 }
 0x1e1   : > { %794 = vmatpush.bf16.msra.mxu0 %v2278_v20  ;;  %1516 = vmatpush.bf16.msra.mxu3 %v2278_v20  ;;  %v1492_v62 = vld [vmem:[#allocation3] sm:$0xff]  ;;  %v1498_v63 = vld [vmem:[#allocation3 + $0x30] sm:$0xff]  ;;  %v1493_v0 = vld [vmem:[#allocation3 + $0x8] sm:$0xff] }
 0x1e2   : > { %v1499_v1 = vld [vmem:[#allocation3 + $0x38] sm:$0xff]  ;;  %v1494_v2 = vld [vmem:[#allocation3 + $0x10] sm:$0xff]  ;;  %v1507_v4 = vld [vmem:[%s2247_s22 + $0x38] sm:$0xff] }
 0x1e3   : > { %v1495_v3 = vld [vmem:[#allocation3 + $0x18] sm:$0xff]  ;;  %919 = vmatpush.bf16.msra.mxu1 %v1507_v4  ;;  %v1505_v6 = vld [vmem:[%s2247_s22 + $0x28] sm:$0xff]  ;;  %v1504_v7 = vld [vmem:[%s2247_s22 + $0x20] sm:$0xff] }
 0x1e4   : > { %v1506_v5 = vld [vmem:[%s2247_s22 + $0x30] sm:$0xff]  ;;  %v1496_v8 = vld [vmem:[#allocation3 + $0x20] sm:$0xff]  ;;  %v1497_v10 = vld [vmem:[#allocation3 + $0x28] sm:$0xff] }
 0x1e5   : > { %795 = vmatpush.bf16.msra.mxu0 %v2281_v22  ;;  %1517 = vmatpush.bf16.msra.mxu3 %v2281_v22  ;;  %v1503_v9 = vld [vmem:[%s2247_s22 + $0x18] sm:$0xff]  ;;  %v1502_v11 = vld [vmem:[%s2247_s22 + $0x10] sm:$0xff]  ;;  %v1501_v12 = vld [vmem:[%s2247_s22 + $0x8] sm:$0xff] }
 0x1e6   : > { %v1500_v13 = vld [vmem:[%s2247_s22] sm:$0xff]  ;;  %v1514_v33 = vld [vmem:[%s2254_s13 + $0x30] sm:$0xff]  ;;  %v1513_v35 = vld [vmem:[%s2254_s13 + $0x28] sm:$0xff] }
 0x1e7   : > { %920 = vmatpush.bf16.msra.mxu1 %v1506_v5  ;;  %v1515_v32 = vld [vmem:[%s2254_s13 + $0x38] sm:$0xff]  ;;  %v1512_v36 = vld [vmem:[%s2254_s13 + $0x20] sm:$0xff]  ;;  %v1510_v43 = vld [vmem:[%s2254_s13 + $0x10] sm:$0xff] }
 0x1e8   : > { %1060 = vmatpush.bf16.msra.mxu2 %v1515_v32  ;;  %v1509_v44 = vld [vmem:[%s2254_s13 + $0x8] sm:$0xff]  ;;  %v1645_v47 = vld [vmem:[%s469_s19] ss:$0 sm:$0xff] }
 0x1e9   : > { %796 = vmatpush.bf16.msra.mxu0 %v612_v26  ;;  %1518 = vmatpush.bf16.msra.mxu3 %v612_v26 }
 0x1eb   : > { %921 = vmatpush.bf16.msra.mxu1 %v1505_v6 }
 0x1ec   : > { %1061 = vmatpush.bf16.msra.mxu2 %v1514_v33 }
 0x1ed   : > { %797 = vmatpush.bf16.msra.mxu0 %v611_v30  ;;  %1519 = vmatpush.bf16.msra.mxu3 %v611_v30 }
 0x1ef   : > { %922 = vmatpush.bf16.msra.mxu1 %v1504_v7 }
 0x1f0   : > { %1062 = vmatpush.bf16.msra.mxu2 %v1513_v35 }
 0x1f1   : > { %798 = vmatpush.bf16.msra.mxu0 %v610_v34  ;;  %1520 = vmatpush.bf16.msra.mxu3 %v610_v34 }
 0x1f3   : > { %923 = vmatpush.bf16.msra.mxu1 %v1503_v9 }
 0x1f4   : > { %1063 = vmatpush.bf16.msra.mxu2 %v1512_v36 }
 0x1f5   : > { %799 = vmatpush.bf16.msra.mxu0 %v609_v38  ;;  %1521 = vmatpush.bf16.msra.mxu3 %v609_v38 }
 0x1f7   : > { %924 = vmatpush.bf16.msra.mxu1 %v1502_v11 }
 0x1f9   : > { %800 = vmatpush.bf16.msra.mxu0 %v608_v42  ;;  %1522 = vmatpush.bf16.msra.mxu3 %v608_v42  ;;  %v1511_v42 = vld [vmem:[%s2254_s13 + $0x18] sm:$0xff] }
 0x1fa   : > { %1064 = vmatpush.bf16.msra.mxu2 %v1511_v42 }
 0x1fb   : > { %925 = vmatpush.bf16.msra.mxu1 %v1501_v12 }
 0x1fd   : > { %801 = vmatpush.bf16.msra.mxu0 %v607_v45  ;;  %1523 = vmatpush.bf16.msra.mxu3 %v607_v45  ;;  %v1508_v45 = vld [vmem:[%s2254_s13] sm:$0xff] }
 0x1fe   : > { %1065 = vmatpush.bf16.msra.mxu2 %v1510_v43 }
 0x1ff   : > { %926 = vmatpush.bf16.msra.mxu1 %v1500_v13 }
 0x200   : > { %802 = vmatmul.bf16.vlgmr.msra.gmra.mxu0 %v1492_v62  ;;  %832 = vmatmul.bf16.vlgmr.msra.gmra.mxu3 %v1498_v63 }
 0x201   : > { %1524 = vmatpush.bf16.msrb.mxu3 %v1507_v4 }
 0x202   : > { %1066 = vmatpush.bf16.msra.mxu2 %v1509_v44 }
 0x205   : > { %1525 = vmatpush.bf16.msrb.mxu3 %v1506_v5 }
 0x206   : > { %1067 = vmatpush.bf16.msra.mxu2 %v1508_v45 }
 0x209   : > { %1526 = vmatpush.bf16.msrb.mxu3 %v1505_v6 }
 0x20d   : > { %1527 = vmatpush.bf16.msrb.mxu3 %v1504_v7 }
 0x210   : > { %807 = vmatmul.bf16.gmra.mxu0 %v1493_v0  ;;  %837 = vmatmul.bf16.gmra.mxu3 %v1499_v1 }
 0x211   : > { %1528 = vmatpush.bf16.msrb.mxu3 %v1503_v9 }
 0x215   : > { %1529 = vmatpush.bf16.msrb.mxu3 %v1502_v11 }
 0x219   : > { %1530 = vmatpush.bf16.msrb.mxu3 %v1501_v12 }
 0x21d   : > { %1531 = vmatpush.bf16.msrb.mxu3 %v1500_v13 }
 0x220   : > { %812 = vmatmul.bf16.gmra.mxu0 %v1494_v2 }
 0x221   : > { %1532 = vmatpush.bf16.msra.mxu3 %v1515_v32 }
 0x225   : > { %1533 = vmatpush.bf16.msra.mxu3 %v1514_v33 }
 0x229   : > { %1534 = vmatpush.bf16.msra.mxu3 %v1513_v35 }
 0x22d   : > { %1535 = vmatpush.bf16.msra.mxu3 %v1512_v36 }
 0x230   : > { %817 = vmatmul.bf16.gmra.mxu0 %v1495_v3 }
 0x231   : > { %1536 = vmatpush.bf16.msra.mxu3 %v1511_v42 }
 0x235   : > { %1537 = vmatpush.bf16.msra.mxu3 %v1510_v43 }
 0x239   : > { %1538 = vmatpush.bf16.msra.mxu3 %v1509_v44 }
 0x23d   : > { %1539 = vmatpush.bf16.msra.mxu3 %v1508_v45 }
 0x240   : > { %822 = vmatmul.bf16.gmra.mxu0 %v1496_v8 }
 0x250   : > { %827 = vmatmul.bf16.gmra.mxu0 %v1497_v10 }
 0x27d   : > { %v803_v14 = vpop.f32.mrf.mxu0 }
 0x283   : > { %v833_v15 = vpop.f32.mrf.mxu3 }
 0x285   : > { %v805_v16 = vpop.f32.mrf.mxu0 }
 0x286   : > { %v843_v17 = vpack.c.bf16 %v805_v16, %v803_v14 }
 0x288   : > { %927 = vmatmul.bf16.vlgmr.msra.gmra.mxu1 %v843_v17 }
 0x28b   : > { %v835_v18 = vpop.f32.mrf.mxu3 }
 0x28c   : > { %v849_v19 = vpack.c.bf16 %v835_v18, %v833_v15 }
 0x28d   : > { %v808_v20 = vpop.f32.mrf.mxu0 }
 0x28e   : > { %957 = vmatmul.bf16.vlgmr.msrb.gmra.mxu3 %v849_v19 }
 0x293   : > { %v838_v21 = vpop.f32.mrf.mxu3 }
 0x295   : > { %v810_v22 = vpop.f32.mrf.mxu0 }
 0x296   : > { %v844_v23 = vpack.c.bf16 %v810_v22, %v808_v20 }
 0x298   : > { %932 = vmatmul.bf16.gmra.mxu1 %v844_v23 }
 0x29b   : > { %v840_v24 = vpop.f32.mrf.mxu3 }
 0x29c   : > { %v850_v25 = vpack.c.bf16 %v840_v24, %v838_v21 }
 0x29d   : > { %v813_v26 = vpop.f32.mrf.mxu0 }
 0x29e   : > { %962 = vmatmul.bf16.gmra.mxu3 %v850_v25 }
 0x2a5   : > { %v815_v27 = vpop.f32.mrf.mxu0 }
 0x2a6   : > { %v845_v28 = vpack.c.bf16 %v815_v27, %v813_v26 }
 0x2a8   : > { %937 = vmatmul.bf16.gmra.mxu1 %v845_v28 }
 0x2ad   : > { %v818_v29 = vpop.f32.mrf.mxu0 }
 0x2b5   : > { %v820_v30 = vpop.f32.mrf.mxu0 }
 0x2b6   : > { %v846_v31 = vpack.c.bf16 %v820_v30, %v818_v29 }
 0x2b8   : > { %942 = vmatmul.bf16.gmra.mxu1 %v846_v31 }
 0x2bd   : > { %v823_v34 = vpop.f32.mrf.mxu0 }
 0x2c5   : > { %v825_v37 = vpop.f32.mrf.mxu0 }
 0x2c6   : > { %v847_v38 = vpack.c.bf16 %v825_v37, %v823_v34 }
 0x2c8   : > { %947 = vmatmul.bf16.gmra.mxu1 %v847_v38 }
 0x2cd   : > { %v828_v39 = vpop.f32.mrf.mxu0 }
 0x2d5   : > { %v830_v40 = vpop.f32.mrf.mxu0 }
 0x2d6   : > { %v848_v41 = vpack.c.bf16 %v830_v40, %v828_v39  ;;  %v1646_v39 = vld [vmem:[%s552_s27] ss:$0 sm:$0xff] }
 0x2d8   : > { %952 = vmatmul.bf16.gmra.mxu1 %v848_v41 }
 0x305   : > { %v928_v46 = vpop.f32.mrf.mxu1 }
 0x306   : > { %v929_v48 = vadd.f32 %v1645_v47, %v928_v46 }
 0x308   : > { %v968_v51 = vmax.f32 %v929_v48, 0.0 }
 0x30d   : > { %v930_v49 = vpop.f32.mrf.mxu1 }
 0x30e   : > { %v931_v50 = vadd.f32 %v1645_v47, %v930_v49 }
 0x310   : > { %v969_v52 = vmax.f32 %v931_v50, 0.0 }
 0x311   : > { %v958_v53 = vpop.f32.mrf.mxu3 }
 0x312   : > { %v984_v54 = vpack.c.bf16 %v969_v52, %v968_v51  ;;  %v959_v56 = vadd.f32 %v1645_v47, %v958_v53 }
 0x314   : > { %1068 = vmatmul.bf16.vlgmr.msra.gmra.mxu2 %v984_v54  ;;  %v980_v58 = vmax.f32 %v959_v56, 0.0 }
 0x315   : > { %v933_v55 = vpop.f32.mrf.mxu1 }
 0x316   : > { %v934_v60 = vadd.f32 %v1645_v47, %v933_v55 }
 0x318   : > { %v970_v1 = vmax.f32 %v934_v60, 0.0 }
 0x319   : > { %v960_v57 = vpop.f32.mrf.mxu3 }
 0x31a   : > { %v961_v59 = vadd.f32 %v1645_v47, %v960_v57 }
 0x31c   : > { %v981_v61 = vmax.f32 %v961_v59, 0.0 }
 0x31d   : > { %v935_v62 = vpop.f32.mrf.mxu1 }
 0x31e   : > { %v936_v63 = vadd.f32 %v1645_v47, %v935_v62  ;;  %v990_v0 = vpack.c.bf16 %v981_v61, %v980_v58 }
 0x320   : > { %v971_v2 = vmax.f32 %v936_v63, 0.0  ;;  %1098 = vmatmul.bf16.vlgmr.msra.gmra.mxu3 %v990_v0 }
 0x321   : > { %v963_v3 = vpop.f32.mrf.mxu3 }
 0x322   : > { %v985_v4 = vpack.c.bf16 %v971_v2, %v970_v1  ;;  %v964_v6 = vadd.f32 %v1645_v47, %v963_v3 }
 0x324   : > { %1073 = vmatmul.bf16.gmra.mxu2 %v985_v4  ;;  %v982_v8 = vmax.f32 %v964_v6, 0.0 }
 0x325   : > { %v938_v5 = vpop.f32.mrf.mxu1 }
 0x326   : > { %v939_v10 = vadd.f32 %v1645_v47, %v938_v5 }
 0x328   : > { %v972_v15 = vmax.f32 %v939_v10, 0.0 }
 0x329   : > { %v965_v7 = vpop.f32.mrf.mxu3 }
 0x32a   : > { %v966_v9 = vadd.f32 %v1645_v47, %v965_v7 }
 0x32c   : > { %v983_v11 = vmax.f32 %v966_v9, 0.0 }
 0x32d   : > { %v940_v12 = vpop.f32.mrf.mxu1 }
 0x32e   : > { %v941_v13 = vadd.f32 %v1645_v47, %v940_v12  ;;  %v991_v14 = vpack.c.bf16 %v983_v11, %v982_v8 }
 0x330   : > { %v973_v16 = vmax.f32 %v941_v13, 0.0  ;;  %1103 = vmatmul.bf16.gmra.mxu3 %v991_v14 }
 0x332   : > { %v986_v17 = vpack.c.bf16 %v973_v16, %v972_v15 }
 0x334   : > { %1078 = vmatmul.bf16.gmra.mxu2 %v986_v17 }
 0x335   : > { %v943_v18 = vpop.f32.mrf.mxu1 }
 0x336   : > { %v944_v19 = vadd.f32 %v1645_v47, %v943_v18 }
 0x338   : > { %v974_v22 = vmax.f32 %v944_v19, 0.0 }
 0x33d   : > { %v945_v20 = vpop.f32.mrf.mxu1 }
 0x33e   : > { %v946_v21 = vadd.f32 %v1645_v47, %v945_v20 }
 0x340   : > { %v975_v23 = vmax.f32 %v946_v21, 0.0 }
 0x342   : > { %v987_v24 = vpack.c.bf16 %v975_v23, %v974_v22 }
 0x344   : > { %1083 = vmatmul.bf16.gmra.mxu2 %v987_v24 }
 0x345   : > { %v948_v25 = vpop.f32.mrf.mxu1 }
 0x346   : > { %v949_v26 = vadd.f32 %v1645_v47, %v948_v25 }
 0x348   : > { %v976_v29 = vmax.f32 %v949_v26, 0.0 }
 0x34d   : > { %v950_v27 = vpop.f32.mrf.mxu1 }
 0x34e   : > { %v951_v28 = vadd.f32 %v1645_v47, %v950_v27 }
 0x350   : > { %v977_v30 = vmax.f32 %v951_v28, 0.0 }
 0x352   : > { %v988_v31 = vpack.c.bf16 %v977_v30, %v976_v29 }
 0x354   : > { %1088 = vmatmul.bf16.gmra.mxu2 %v988_v31 }
 0x355   : > { %v953_v32 = vpop.f32.mrf.mxu1 }
 0x356   : > { %v954_v33 = vadd.f32 %v1645_v47, %v953_v32 }
 0x358   : > { %v978_v36 = vmax.f32 %v954_v33, 0.0 }
 0x35d   : > { %v955_v34 = vpop.f32.mrf.mxu1 }
 0x35e   : > { %v956_v35 = vadd.f32 %v1645_v47, %v955_v34 }
 0x360   : > { %v979_v37 = vmax.f32 %v956_v35, 0.0 }
 0x362   : > { %v989_v38 = vpack.c.bf16 %v979_v37, %v978_v36 }
 0x364   : > { %1093 = vmatmul.bf16.gmra.mxu2 %v989_v38 }
 0x397   : > { %v1069_v40 = vpop.f32.mrf.mxu2 }
 0x398   : > { %v1070_v41 = vadd.f32 %v1646_v39, %v1069_v40 }
 0x39a   : > { %v1109_v42 = vmax.f32 %v1070_v41, 0.0 }
 0x39c   : > { %1125 = vst [vmem:[#allocation2 + $0x30] sm:$0xff] %v1109_v42 }
 0x39f   : > { %v1071_v43 = vpop.f32.mrf.mxu2 }
 0x3a0   : > { %v1072_v44 = vadd.f32 %v1646_v39, %v1071_v43 }
 0x3a2   : > { %v1110_v45 = vmax.f32 %v1072_v44, 0.0 }
 0x3a3   : > { %v1099_v46 = vpop.f32.mrf.mxu3 }
 0x3a4   : > { %1126 = vst [vmem:[#allocation2] sm:$0xff] %v1110_v45  ;;  %v1100_v48 = vadd.f32 %v1646_v39, %v1099_v46 }
 0x3a6   : > { %v1121_v47 = vmax.f32 %v1100_v48, 0.0 }
 0x3a7   : > { %v1074_v49 = vpop.f32.mrf.mxu2 }
 0x3a8   : > { %v1075_v50 = vadd.f32 %v1646_v39, %v1074_v49  ;;  %1137 = vst [vmem:[#allocation2 + $0x60] sm:$0xff] %v1121_v47 }
 0x3aa   : > { %v1111_v51 = vmax.f32 %v1075_v50, 0.0 }
 0x3ab   : > { %v1101_v52 = vpop.f32.mrf.mxu3 }
 0x3ac   : > { %1127 = vst [vmem:[#allocation2 + $0x58] sm:$0xff] %v1111_v51  ;;  %v1102_v53 = vadd.f32 %v1646_v39, %v1101_v52 }
 0x3ae   : > { %v1122_v54 = vmax.f32 %v1102_v53, 0.0 }
 0x3af   : > { %v1076_v55 = vpop.f32.mrf.mxu2 }
 0x3b0   : > { %v1077_v56 = vadd.f32 %v1646_v39, %v1076_v55  ;;  %1138 = vst [vmem:[#allocation2 + $0x70] sm:$0xff] %v1122_v54 }
 0x3b2   : > { %v1112_v57 = vmax.f32 %v1077_v56, 0.0 }
 0x3b3   : > { %v1104_v58 = vpop.f32.mrf.mxu3 }
 0x3b4   : > { %1128 = vst [vmem:[#allocation2 + $0x18] sm:$0xff] %v1112_v57  ;;  %v1105_v59 = vadd.f32 %v1646_v39, %v1104_v58 }
 0x3b6   : > { %v1123_v60 = vmax.f32 %v1105_v59, 0.0 }
 0x3b7   : > { %v1079_v61 = vpop.f32.mrf.mxu2 }
 0x3b8   : > { %v1080_v62 = vadd.f32 %v1646_v39, %v1079_v61  ;;  %1139 = vst [vmem:[#allocation2 + $0x78] sm:$0xff] %v1123_v60 }
 0x3ba   : > { %v1113_v63 = vmax.f32 %v1080_v62, 0.0 }
 0x3bb   : > { %v1106_v0 = vpop.f32.mrf.mxu3 }
 0x3bc   : > { %1129 = vst [vmem:[#allocation2 + $0x50] sm:$0xff] %v1113_v63  ;;  %v1107_v1 = vadd.f32 %v1646_v39, %v1106_v0 }
 0x3be   : > { %v1124_v2 = vmax.f32 %v1107_v1, 0.0 }
 0x3bf   : > { %v1081_v3 = vpop.f32.mrf.mxu2 }
 0x3c0   : > { %v1082_v4 = vadd.f32 %v1646_v39, %v1081_v3  ;;  %1140 = vst [vmem:[#allocation2 + $0x28] sm:$0xff] %v1124_v2 }
 0x3c2   : > { %v1114_v5 = vmax.f32 %v1082_v4, 0.0 }
 0x3c4   : > { %1130 = vst [vmem:[#allocation2 + $0x68] sm:$0xff] %v1114_v5 }
 0x3c7   : > { %v1084_v6 = vpop.f32.mrf.mxu2 }
 0x3c8   : > { %v1085_v7 = vadd.f32 %v1646_v39, %v1084_v6 }
 0x3ca   : > { %v1115_v8 = vmax.f32 %v1085_v7, 0.0 }
 0x3cc   : > { %1131 = vst [vmem:[#allocation2 + $0x8] sm:$0xff] %v1115_v8 }
 0x3cf   : > { %v1086_v9 = vpop.f32.mrf.mxu2 }
 0x3d0   : > { %v1087_v10 = vadd.f32 %v1646_v39, %v1086_v9 }
 0x3d2   : > { %v1116_v11 = vmax.f32 %v1087_v10, 0.0 }
 0x3d4   : > { %1132 = vst [vmem:[#allocation2 + $0x48] sm:$0xff] %v1116_v11 }
 0x3d7   : > { %v1089_v12 = vpop.f32.mrf.mxu2 }
 0x3d8   : > { %v1090_v13 = vadd.f32 %v1646_v39, %v1089_v12 }
 0x3da   : > { %v1117_v14 = vmax.f32 %v1090_v13, 0.0 }
 0x3dc   : > { %1133 = vst [vmem:[#allocation2 + $0x40] sm:$0xff] %v1117_v14 }
 0x3df   : > { %v1091_v15 = vpop.f32.mrf.mxu2 }
 0x3e0   : > { %v1092_v16 = vadd.f32 %v1646_v39, %v1091_v15 }
 0x3e2   : > { %v1118_v17 = vmax.f32 %v1092_v16, 0.0 }
 0x3e4   : > { %1134 = vst [vmem:[#allocation2 + $0x20] sm:$0xff] %v1118_v17 }
 0x3e7   : > { %v1094_v18 = vpop.f32.mrf.mxu2 }
 0x3e8   : > { %v1095_v19 = vadd.f32 %v1646_v39, %v1094_v18 }
 0x3ea   : > { %v1119_v20 = vmax.f32 %v1095_v19, 0.0 }
 0x3ec   : > { %1135 = vst [vmem:[#allocation2 + $0x10] sm:$0xff] %v1119_v20 }
 0x3ef   : > { %v1096_v21 = vpop.f32.mrf.mxu2 }
 0x3f0   : > { %v1097_v22 = vadd.f32 %v1646_v39, %v1096_v21 }
 0x3f2   : > { %v1120_v23 = vmax.f32 %v1097_v22, 0.0 }
 0x3f4   : > { %1136 = vst [vmem:[#allocation2 + $0x38] sm:$0xff] %v1120_v23 }
 0x3f5 PF: > { %s2390_s6 = sld [smem:[#allocation26_spill]]  ;;  %s1979_s29 = smov [#allocation17]  }
 0x3f6   : > { %s2391_s11 = sld [smem:[#allocation34_spill]]  ;;  %s1146_s23 = sshll.u32 %s1979_s29, 4  ;;  %s1147_s23 = int_to_ptr.vmem [resolvable:$true] %s1146_s23 }
 0x3f7   : > { %s1980_s24 = smov 128   ;;  %s1981_s15 = smov 8  }
 0x3fb   : > { %p1599_p5 = scmp.eq.s32.totalorder %s2390_s6, 4 }
 0x3fc   : > { %s1148_s12 = sshll.u32 %s2391_s11, 4  ;;  %s1149_s12 = int_to_ptr.hbm [resolvable:$true] %s1148_s12 }
 0x3fd   : > { %1563 = dma.vmem_to_hbm [thread:$0]  (%p1599_p5), %s1147_s23, 256, %s1149_s12, [#allocation5], %s1980_s24, %s1980_s24, %s1981_s15  }
 0x3fe   : > { %1952 = dma.done.wait (%p1599_p5), [#allocation5], 256  }
 0x3ff   : > { %1954 = vsyncadd (%p1599_p5), [#allocation5], 4294967040 }
 0x400 PF: > { %s2392_s12 = sld [smem:[#allocation28_spill]] }
 0x401   : > { %s2393_s30 = sld [smem:[#allocation24_spill]] }
 0x402   : > { %s2394_s10 = sld [smem:[#allocation25_spill]] }
 0x403   : > { %s2395_s11 = sld [smem:[#allocation29_spill]] }
 0x406   : > { %p28_p6 = scmp.ge.s32.totalorder %s2392_s12, 7  }
 0x408   :  { %30 = sbr.rel (!%p28_p6) target bundleno = 16 (0x10), region = 165 }
 0x40d   :  { %1165 = vsyncpa [#allocation4], 1 }
 0x40e   :  { %1167 = vsyncpa [#allocation4 + $0x1], 1 }
 0x40f   :  { %1168 = vsyncpa [#allocation7], 1 }
 0x410   :  { %1169 = vsyncpa [#allocation10], 1 }
 0x411   :  { %1171 = vsyncpa [#allocation10 + $0x1], 1 }
 0x412   :  { %1172 = vsyncpa [#allocation13], 1 }
 0x413   :  { %1174 = vsyncpa [#allocation13 + $0x1], 1 }
 0x414   :  { %1175 = vsyncpa [#allocation16], 1 }
 0x415   :  { %1177 = vsyncpa [#allocation16 + $0x1], 1 }
 0x416   :  { %1178 = vsyncpa [#allocation5], 1 }
 0x417   :  { %1180 = vsyncpa [#allocation5 + $0x1], 1 }

</bundles_post_ra>
